<compile_context>
chip_gen: v7x
topology: tpu7x:2x2x1
jax: 0.10.0
libtpu: 0.0.40
codegen_flags: <defaults>
</compile_context>

<pallas_src>
import jax
import jax.numpy as jnp
from jax import lax
from jax.experimental import pallas as pl
from jax.experimental.pallas import tpu as pltpu

EPS = 1e-5


def conv1x1_bn_kernel(x_ref, w_ref, gamma_ref, beta_ref, o_ref):
    # x_ref:     [P, Cin]      (full P in one block -> batch stats are exact)
    # w_ref:     [Cin, Tn]     (pre-transposed conv weight tile, lane-dense)
    # gamma_ref: [1, Tn]
    # beta_ref:  [1, Tn]
    # o_ref:     [P, Tn]
    x = x_ref[...]
    w = w_ref[...]

    # Canonical [M,K] @ [K,N] on the MXU with f32 accumulation.
    y = jnp.dot(x, w, preferred_element_type=jnp.float32)      # [P, Tn]

    p_true = y.shape[0]                                         # block P == full P
    inv_p = 1.0 / p_true

    # BatchNorm (training): per-channel batch mean / biased variance over P.
    mean = jnp.sum(y, axis=0, keepdims=True) * inv_p            # [1, Tn]
    yc = y - mean                                               # centered, reused
    var = jnp.sum(yc * yc, axis=0, keepdims=True) * inv_p       # [1, Tn]

    scale = gamma_ref[...] * lax.rsqrt(var + EPS)               # [1, Tn]
    o_ref[...] = yc * scale + beta_ref[...]                     # single FMA pass


def conv1x1_bn(x_nchw, weight, gamma, beta, *, tile_n=384):
    """x_nchw: [N, Cin, H, W]; weight: [Cout, Cin] or [Cout, Cin, 1, 1]."""
    N, Cin, H, W = x_nchw.shape
    Cout = weight.shape[0]
    P = N * H * W
    # Legal TPU tile: last block dim must be a multiple of 128 (or full extent).
    assert Cout % tile_n == 0 and (tile_n % 128 == 0 or tile_n == Cout), (Cout, tile_n)

    # One-time layout canonicalization in the wrapper (amortized to noise):
    x_pc = jnp.transpose(x_nchw, (0, 2, 3, 1)).reshape(P, Cin)   # [P, Cin]
    w_mat = jnp.transpose(weight.reshape(Cout, Cin))             # [Cin, Cout]
    gamma2 = gamma.reshape(1, Cout)
    beta2 = beta.reshape(1, Cout)

    cost = pl.CostEstimate(
        flops=2 * P * Cin * Cout,
        transcendentals=Cout,                                    # rsqrt per channel
        bytes_accessed=4 * (P * Cin + Cin * Cout + 2 * Cout + P * Cout),
    )

    out_flat = pl.pallas_call(
        conv1x1_bn_kernel,
        out_shape=jax.ShapeDtypeStruct((P, Cout), jnp.float32),
        grid_spec=pl.GridSpec(
            grid=(Cout // tile_n,),
            in_specs=[
                # x: full P block every step -> exact per-channel batch stats.
                pl.BlockSpec((P, Cin), lambda j: (0, 0)),
                pl.BlockSpec((Cin, tile_n), lambda j: (0, j)),   # weight tile
                pl.BlockSpec((1, tile_n), lambda j: (0, j)),     # gamma tile
                pl.BlockSpec((1, tile_n), lambda j: (0, j)),     # beta tile
            ],
            out_specs=pl.BlockSpec((P, tile_n), lambda j: (0, j)),
        ),
        compiler_params=pltpu.CompilerParams(
            dimension_semantics=("parallel",)),                  # megacore-shardable
        cost_estimate=cost,
    )(x_pc, w_mat, gamma2, beta2)

    # [P, Cout] -> [N, Cout, H, W]  (tiny; keeps the kernel output lane-dense)
    return jnp.transpose(out_flat.reshape(N, H, W, Cout), (0, 3, 1, 2))


def reference(x_nchw, weight, gamma, beta):
    # Pure-JAX reference for sanity check.
    N, Cin, H, W = x_nchw.shape
    Cout = weight.shape[0]
    x_flat = jnp.transpose(x_nchw, (0, 2, 3, 1)).reshape(-1, Cin)
    y = x_flat @ weight.reshape(Cout, Cin).T
    mean = jnp.mean(y, axis=0, keepdims=True)
    var = jnp.mean((y - mean) ** 2, axis=0, keepdims=True)
    z = (y - mean) * lax.rsqrt(var + EPS) * gamma[None, :] + beta[None, :]
    return jnp.transpose(z.reshape(N, H, W, Cout), (0, 3, 1, 2))


if __name__ == "__main__":
    key = jax.random.PRNGKey(0)
    k_x, k_w = jax.random.split(key)

    # Shapes implied by the module's forward: x120 = [1, 192, 7, 7] -> [1, 1152, 7, 7]
    N, Cin, H, W = 1, 192, 7, 7
    Cout = 1152

    x = jax.random.normal(k_x, (N, Cin, H, W), dtype=jnp.float32)
    # Conv2d weight ~ N(0, 1/Cin); BN gamma=1, beta=0 (deterministic init)
    weight = jax.random.normal(k_w, (Cout, Cin), dtype=jnp.float32) * (1.0 / Cin) ** 0.5
    gamma = jnp.ones((Cout,), dtype=jnp.float32)
    beta = jnp.zeros((Cout,), dtype=jnp.float32)

    out = conv1x1_bn(x, weight, gamma, beta)
    jax.block_until_ready(out)

    ref = reference(x, weight, gamma, beta)
    assert out.shape == (N, Cout, H, W), out.shape
    err = float(jnp.max(jnp.abs(out - ref)))
    assert jnp.allclose(out, ref, atol=1e-3, rtol=1e-3), err

    print("KERNEL_OK")
</pallas_src>

<mosaic_0001>
module attributes {stable_mosaic.version = 11 : i64} {
  func.func @conv1x1_bn_kernel(%arg0: i32, %arg1: memref<49x192xf32, #tpu.memory_space<vmem>>, %arg2: memref<192x384xf32, #tpu.memory_space<vmem>>, %arg3: memref<1x384xf32, #tpu.memory_space<vmem>>, %arg4: memref<1x384xf32, #tpu.memory_space<vmem>>, %arg5: memref<49x384xf32, #tpu.memory_space<vmem>>) attributes {dimension_semantics = [#tpu.dimension_semantics<parallel>], iteration_bounds = array<i64: 3>, scalar_prefetch = 0 : i64, scratch_operands = 0 : i64, tpu.core_type = #tpu.core_type<tc>, window_params = [{pipeline_mode = #tpu.pipeline_mode<synchronous>, transform_indices = @transform_0, window_bounds = array<i64: 49, 192>}, {transform_indices = @transform_1, window_bounds = array<i64: 192, 384>}, {transform_indices = @transform_2, window_bounds = array<i64: 1, 384>}, {transform_indices = @transform_3, window_bounds = array<i64: 1, 384>}, {transform_indices = @transform_4, window_bounds = array<i64: 49, 384>}]} {
    %c0 = arith.constant 0 : index
    %c0_0 = arith.constant 0 : index
    %0 = vector.load %arg1[%c0, %c0_0] : memref<49x192xf32, #tpu.memory_space<vmem>>, vector<49x192xf32>
    %c0_1 = arith.constant 0 : index
    %c0_2 = arith.constant 0 : index
    %1 = vector.load %arg2[%c0_1, %c0_2] : memref<192x384xf32, #tpu.memory_space<vmem>>, vector<192x384xf32>
    %cst = arith.constant dense<0.000000e+00> : vector<49x384xf32>
    %2 = tpu.matmul %0, %1, %cst {dimension_numbers = #tpu.dot_dimension_numbers<[1], [0], [0], [1], [0, 0, 1, 1], [], []>} : vector<49x192xf32>, vector<192x384xf32>, vector<49x384xf32> -> vector<49x384xf32>
    %cst_3 = arith.constant dense<0.000000e+00> : vector<384xf32>
    %3 = vector.multi_reduction <add>, %2, %cst_3 [0] : vector<49x384xf32> to vector<384xf32>
    %4 = vector.shape_cast %3 : vector<384xf32> to vector<1x384xf32>
    %cst_4 = arith.constant 0.0204081628 : f32
    %5 = vector.broadcast %cst_4 : f32 to vector<1x384xf32>
    %6 = arith.mulf %4, %5 : vector<1x384xf32>
    %7 = vector.broadcast %6 : vector<1x384xf32> to vector<49x384xf32>
    %8 = arith.subf %2, %7 : vector<49x384xf32>
    %9 = arith.mulf %8, %8 : vector<49x384xf32>
    %cst_5 = arith.constant dense<0.000000e+00> : vector<384xf32>
    %10 = vector.multi_reduction <add>, %9, %cst_5 [0] : vector<49x384xf32> to vector<384xf32>
    %11 = vector.shape_cast %10 : vector<384xf32> to vector<1x384xf32>
    %cst_6 = arith.constant 0.0204081628 : f32
    %12 = vector.broadcast %cst_6 : f32 to vector<1x384xf32>
    %13 = arith.mulf %11, %12 : vector<1x384xf32>
    %c0_7 = arith.constant 0 : index
    %c0_8 = arith.constant 0 : index
    %14 = vector.load %arg3[%c0_7, %c0_8] : memref<1x384xf32, #tpu.memory_space<vmem>>, vector<1x384xf32>
    %cst_9 = arith.constant 9.99999974E-6 : f32
    %15 = vector.broadcast %cst_9 : f32 to vector<1x384xf32>
    %16 = arith.addf %13, %15 : vector<1x384xf32>
    %17 = math.rsqrt %16 : vector<1x384xf32>
    %18 = arith.mulf %14, %17 : vector<1x384xf32>
    %19 = vector.broadcast %18 : vector<1x384xf32> to vector<49x384xf32>
    %20 = arith.mulf %8, %19 : vector<49x384xf32>
    %c0_10 = arith.constant 0 : index
    %c0_11 = arith.constant 0 : index
    %21 = vector.load %arg4[%c0_10, %c0_11] : memref<1x384xf32, #tpu.memory_space<vmem>>, vector<1x384xf32>
    %22 = vector.broadcast %21 : vector<1x384xf32> to vector<49x384xf32>
    %23 = arith.addf %20, %22 : vector<49x384xf32>
    %c0_12 = arith.constant 0 : index
    %c0_13 = arith.constant 0 : index
    %24 = vector.load %arg5[%c0_12, %c0_13] : memref<49x384xf32, #tpu.memory_space<vmem>>, vector<49x384xf32>
    tpu.vector_store %arg5[%c0_12, %c0_13], %23 {strides = array<i32>} : memref<49x384xf32, #tpu.memory_space<vmem>>, vector<49x384xf32>,
    return
  }
  func.func @transform_0(%arg0: i32) -> (i32, i32) {
    %c0_i32 = arith.constant 0 : i32
    %c0_i32_0 = arith.constant 0 : i32
    %c0_i32_1 = arith.constant 0 : i32
    return %c0_i32, %c0_i32_0 : i32, i32
  }
  func.func @transform_1(%arg0: i32) -> (i32, i32) {
    %c0_i32 = arith.constant 0 : i32
    %c0_i32_0 = arith.constant 0 : i32
    return %c0_i32, %arg0 : i32, i32
  }
  func.func @transform_2(%arg0: i32) -> (i32, i32) {
    %c0_i32 = arith.constant 0 : i32
    %c0_i32_0 = arith.constant 0 : i32
    return %c0_i32, %arg0 : i32, i32
  }
  func.func @transform_3(%arg0: i32) -> (i32, i32) {
    %c0_i32 = arith.constant 0 : i32
    %c0_i32_0 = arith.constant 0 : i32
    return %c0_i32, %arg0 : i32, i32
  }
  func.func @transform_4(%arg0: i32) -> (i32, i32) {
    %c0_i32 = arith.constant 0 : i32
    %c0_i32_0 = arith.constant 0 : i32
    return %c0_i32, %arg0 : i32, i32
  }
}

</mosaic_0001>

<bundles_post_ra>
// kernel: tpu_custom_call.1
= control target key start
LH: loop header
LB: loop body
LE: loop exit
PB: predicated region body
PF: predicated region fallthrough
CT: control target
= control target key end

     0   :  { %s1905_s0 = inlined_call_operand.hbm [shape: f32[49,192], index: 0, kind: input, shape index: {}]   ;;  %s1906_s1 = inlined_call_operand.hbm [shape: f32[192,1152], index: 1, kind: input, shape index: {}]   ;;  %s1907_s2 = inlined_call_operand.hbm [shape: f32[1,1152], index: 2, kind: input, shape index: {}]   ;;  %s1908_s3 = inlined_call_operand.vmem [shape: f32[1,1152], index: 3, kind: input, shape index: {}]   ;;  %s1909_s4 = inlined_call_operand.hbm [shape: f32[49,1152], index: 4, kind: output, shape index: {}]  }
   0x1   :  { %1918 = sst [smem:[#allocation14_spill]] %s1906_s1 }
   0x2   :  { %9 = vsyncpa [#allocation3], 0 }
   0x3   :  { %10 = vsyncpa [#allocation6], 0 }
   0x4   :  { %12 = vsyncpa [#allocation6 + $0x1], 0 }
   0x5   :  { %13 = vsyncpa [#allocation4], 0 }
   0x6   :  { %15 = vsyncpa [#allocation4 + $0x1], 0  ;;  %s1383_s15 = smov 0   ;;  %s1385_s16 = smov 0  }
   0x7   :  { %s1387_s17 = smov 0   ;;  %s1389_s18 = smov 0  }
   0x8 LB: > { %1919 = sst [smem:[#allocation12_spill]] %s1338_s17  ;;  %s1404_s19 = sadd.s32 1, %s1342_s18   ;;  %s1342_s18 = sphi %s1389_s18, %s1941_s18   ;;  %s1338_s17 = sphi %s1387_s17, %s1938_s17   ;;  %s1334_s16 = sphi %s1385_s16, %s1940_s16   ;;  %s1330_s15 = sphi %s1383_s15, %s1939_s15  }
   0x9   : > { %s49_s20 = sadd.s32 1, %s1338_s17  ;;  %s46_s21 = ssub.s32 %s1342_s18, %s1404_s19 }
   0xa   : > { %p56_p0 = scmp.ne.s32.totalorder %s1338_s17, %s1334_s16  ;;  %p47_p1 = scmp.eq.s32.totalorder %s46_s21, 0 }
   0xb   : > { %p57_p2 = scmp.eq.s32.totalorder %s1342_s18, 0  ;;  %p1132_p3 = scmp.lt.s32.totalorder %s1342_s18, 3 }
   0xc   : > { %s1414_s22 = scalar_select %p47_p1, %s1338_s17, %s49_s20  }
   0xd   : > { %p58_p4 = por %p57_p2, %p56_p0  ;;  %s177_s23 = sand.u32 1, %s1342_s18  }
   0xe   : > { %1920 = sst [smem:[#allocation13_spill]] %s1414_s22  ;;  %s179_s24 = sand.u32 1, %s1338_s17  }
   0xf   : > { %s1101_s25 = smul.u32 576, %s179_s24  ;;  %p1423_p5 = pnand %p1132_p3, %p58_p4 }
  0x10   : > { %s1014_s27 = smul.u32 384, %s1342_s18  ;;  %s1922_s1 = sld [smem:[#allocation14_spill]] }
  0x11   : > { %s1921_s26 = scalar_select %p1423_p5, 1, 0 }
  0x12   : > { %s181_s5 = scalar_lea.vmem [#allocation5], %s1101_s25  ;;  %s1435_s7 = scalar_lea.sflag [#allocation6], %s177_s23 }
  0x13   : > { %s188_s6 = sshll.u32 %s181_s5, 4  ;;  %p1911_p7 = pneg %p1423_p5  ;;  %s1433_s6 = int_to_ptr.vmem [resolvable:$true] %s188_s6 }
  0x16   : > { %s1431_s30 = scalar_lea.hbm %s1922_s1, %s1014_s27  ;;  %s1189_s11 = scalar_lea.hbm %s1922_s1, 27648 }
  0x17   : > { %s1184_s8 = scalar_lea.hbm %s1431_s30, 9216  ;;  %p1190_p10 = scmp.lt.u32.totalorder %s1431_s30, %s1922_s1 }
  0x18   : > { %p1185_p6 = scmp.ne.s32.totalorder %s1431_s30, %s1184_s8  ;;  %p1191_p11 = scmp.lt.u32.totalorder %s1189_s11, %s1184_s8 }
  0x19   : > { %p1193_p13 = scmp.lt.u32.totalorder %s1184_s8, %s1431_s30 }
  0x1a   : > { %p1187_p8 = pnand %p1911_p7, %p1185_p6  ;;  %p1192_p12 = por %p1191_p11, %p1190_p10 }
  0x1c   : > { %p1188_p9 = pneg %p1187_p8  ;;  %p1194_p1 = por %p1193_p13, %p1192_p12 }
  0x1e   : > { %p1195_p2 = pnand %p1194_p1, %p1188_p9 }
  0x20   : > { %1198 = shalt.err (!%p1195_p2)
}
  0x21   : > { %s1199_s14 = scalar_lea.vmem %s1433_s6, 9216  ;;  %s1344_s20 = smov [#allocation5]  }
  0x22   : > { %p1200_p3 = scmp.ne.s32.totalorder %s1433_s6, %s1199_s14  ;;  %s1204_s21 = sshll.u32 %s1344_s20, 4  ;;  %s1205_s21 = int_to_ptr.vmem [resolvable:$false] %s1204_s21 }
  0x23   : > { %s1206_s23 = scalar_lea.vmem %s1205_s21, 18432  ;;  %p1207_p8 = scmp.lt.s32.totalorder %s1433_s6, %s1205_s21 }
  0x24   : > { %p1202_p4 = pnand %p1200_p3, %p1911_p7  ;;  %p1208_p10 = scmp.lt.s32.totalorder %s1206_s23, %s1199_s14 }
  0x26   : > { %p1203_p6 = pneg %p1202_p4  ;;  %p1209_p11 = por %p1208_p10, %p1207_p8 }
  0x28   : > { %p1210_p12 = pnand %p1209_p11, %p1203_p6 }
  0x2a   : > { %1213 = shalt.err (!%p1210_p12)
}
  0x2b   : > { %s1345_s25 = smov 1152   ;;  %s1346_s27 = smov 384  }
  0x2c   : > { %s1347_s28 = smov 24   ;;  %s1464_s29 = sadd.s32 4294967295, %s1342_s18  }
  0x2d   : > { %1123 = dma.hbm_to_vmem [thread:$0]  (!%p1423_p5), %s1431_s30, 9216, %s1433_s6, %s1435_s7, %s1345_s25, %s1346_s27, %s1347_s28  }
  0x2e   : > { %s989_s5 = sadd.s32 4294967294, %s1342_s18   ;;  %p62_p9 = scmp.ne.s32.totalorder %s1334_s16, %s1330_s15 }
  0x2f   : > { %p1910_p13 = scmp.eq.s32.totalorder %s1464_s29, 0  ;;  %p138_p1 = scmp.eq.s32.totalorder %s1464_s29, 2 }
  0x30   : > { %p144_p2 = scmp.eq.s32.totalorder %s989_s5, 2  ;;  %p990_p3 = scmp.ge.s32.totalorder %s1342_s18, 1 }
  0x31   : > { %p1474_p4 = por %p1910_p13, %p62_p9  ;;  %p1481_p6 = por %p138_p1, %p56_p0 }
  0x32   : > { %p1485_p8 = por %p144_p2, %p62_p9  ;;  %p151_p10 = scmp.lt.s32.totalorder %s1342_s18, 4 }
  0x33   : > { %s1923_s8 = scalar_select %p1474_p4, 1, 0 }
  0x34   : > { %s1924_s30 = scalar_select %p1481_p6, 1, 0 }
  0x35   : > { %s1925_s6 = scalar_select %p1485_p8, 1, 0 }
  0x36   : > { %p1490_p11 = pnand %p990_p3, %p151_p10  ;;  %s1348_s10 = smov [#allocation2]  }
  0x37   : > { %s163_s11 = sshll.u32 %s1348_s10, 4  ;;  %s1102_s12 = smul.u32 3, %s179_s24  ;;  %s164_s11 = int_to_ptr.vmem [resolvable:$true] %s163_s11 }
  0x38   : > { %s1926_s9 = scalar_select %p1490_p11, 1, 0 }
  0x39   : > { %p1116_p12 = pneg %p1490_p11  ;;  %s1015_s14 = smul.u32 48, %s1342_s18 }
  0x3a   : > { %s1214_s28 = scalar_lea.hbm %s1905_s0, 1792 }
  0x3b   : > { %p1500_p0 = pnand %p1116_p12, %p1910_p13  ;;  %s1508_s23 = scalar_lea.hbm %s1907_s2, %s1015_s14 }
  0x3c   : > { %p1215_p9 = scmp.ne.s32.totalorder %s1905_s0, %s1214_s28  ;;  %p1221_p10 = scmp.lt.u32.totalorder %s1214_s28, %s1905_s0 }
  0x3d   : > { %p1216_p1 = pneg %p1500_p0 }
  0x3f   : > { %p1217_p2 = pnand %p1216_p1, %p1215_p9 }
  0x41   : > { %p1218_p3 = pneg %p1217_p2 }
  0x43   : > { %p1223_p12 = pnand %p1221_p10, %p1218_p3 }
  0x45   : > { %1226 = shalt.err (!%p1223_p12)
}
  0x46   : > { %s1227_s14 = scalar_lea.vmem %s164_s11, 1792  ;;  %p1235_p6 = scmp.lt.s32.totalorder %s164_s11, %s164_s11 }
  0x47   : > { %p1228_p13 = scmp.ne.s32.totalorder %s164_s11, %s1227_s14  ;;  %p1236_p4 = scmp.lt.s32.totalorder %s1227_s14, %s1227_s14 }
  0x49   : > { %p1230_p7 = pnand %p1228_p13, %p1216_p1  ;;  %p1237_p11 = por %p1236_p4, %p1235_p6 }
  0x4b   : > { %p1231_p8 = pneg %p1230_p7 }
  0x4d   : > { %p1238_p5 = pnand %p1237_p11, %p1231_p8 }
  0x4f   : > { %1241 = shalt.err (!%p1238_p5)
}
  0x50   : > { %s1349_s20 = smov 256   ;;  %s1350_s1 = smov 16  }
  0x51   : > { %1119 = dma.hbm_to_vmem [thread:$0]  (!%p1500_p0), %s1905_s0, 1792, %s164_s11, [#allocation3], %s1349_s20, %s1349_s20, %s1350_s1  }
  0x52   : > { %s202_s27 = scalar_lea.vmem [#allocation7], %s1102_s12  ;;  %s1242_s5 = scalar_lea.hbm %s1508_s23, 48 }
  0x53   : > { %s210_s28 = sshll.u32 %s202_s27, 4  ;;  %p1243_p7 = scmp.ne.s32.totalorder %s1508_s23, %s1242_s5  ;;  %s211_s28 = int_to_ptr.vmem [resolvable:$true] %s210_s28 }
  0x54   : > { %p1928_p13 = scmp.ne.s32.totalorder %s1921_s26, 0  ;;  %s1247_s14 = scalar_lea.hbm %s1907_s2, 144 }
  0x55   : > { %p1248_p8 = scmp.lt.u32.totalorder %s1508_s23, %s1907_s2  ;;  %p1249_p11 = scmp.lt.u32.totalorder %s1247_s14, %s1242_s5 }
  0x56   : > { %p1929_p5 = pneg %p1928_p13  ;;  %p1251_p0 = scmp.lt.u32.totalorder %s1242_s5, %s1508_s23 }
  0x57   : > { %p1250_p9 = por %p1249_p11, %p1248_p8 }
  0x58   : > { %p1245_p4 = pnand %p1243_p7, %p1929_p5 }
  0x59   : > { %p1252_p1 = por %p1251_p0, %p1250_p9 }
  0x5a   : > { %p1246_p6 = pneg %p1245_p4 }
  0x5c   : > { %p1253_p2 = pnand %p1252_p1, %p1246_p6 }
  0x5e   : > { %1256 = shalt.err (!%p1253_p2)
}
  0x5f   : > { %s1257_s11 = scalar_lea.vmem %s211_s28, 48  ;;  %p1930_p10 = pmov %p1929_p5 }
  0x60   : > { %p1258_p3 = scmp.ne.s32.totalorder %s211_s28, %s1257_s11  ;;  %s1351_s12 = smov [#allocation7]  }
  0x61   : > { %s1262_s13 = sshll.u32 %s1351_s12, 4  ;;  %s1263_s13 = int_to_ptr.vmem [resolvable:$false] %s1262_s13 }
  0x62   : > { %p1260_p12 = pnand %p1258_p3, %p1930_p10  ;;  %s1264_s20 = scalar_lea.vmem %s1263_s13, 96 }
  0x63   : > { %p1265_p5 = scmp.lt.s32.totalorder %s211_s28, %s1263_s13  ;;  %p1266_p4 = scmp.lt.s32.totalorder %s1264_s20, %s1257_s11 }
  0x64   : > { %p1261_p7 = pneg %p1260_p12 }
  0x65   : > { %p1267_p8 = por %p1266_p4, %p1265_p5 }
  0x67   : > { %p1268_p11 = pnand %p1267_p8, %p1261_p7 }
  0x69   : > { %1271 = shalt.err (!%p1268_p11)
}
  0x6a   : > { %1126 = dma.hbm_to_vmem [thread:$0]  (!%p1928_p13), %s1508_s23, 48, %s211_s28, %s1435_s7  }
  0x6b   : > { %p1931_p6 = scmp.ne.s32.totalorder %s1926_s9, 0 }
  0x6c   : > { %p1932_p9 = scmp.eq.s32.totalorder (!%p1931_p6), %s1464_s29, 0 }
  0x6d   : > { %227 = sbr.rel (%p1931_p6) target bundleno = 521 (0x209), region = 36 }
  0x74   : > { %1317 = dma.done.wait (%p1932_p9), [#allocation3], 1792   ;;  %p1933_p0 = pmov %p1932_p9 }
  0x75   : > { %s233_s17 = sand.u32 1, %s1464_s29   ;;  %s1554_s22 = sand.u32 1, %s1334_s16  }
  0x76   : > { %1319 = vsyncadd (%p1933_p0), [#allocation3], 4294965504  ;;  %s1103_s26 = smul.u32 576, %s1554_s22  ;;  %s234_s1 = scalar_lea.sflag [#allocation6], %s233_s17 }
  0x77   : > { %p1934_p13 = scmp.ne.s32.totalorder %s1923_s8, 0 }
  0x78   : > { %s1557_s21 = scalar_lea.vmem [#allocation5], %s1103_s26 }
  0x79   : > { %1321 = dma.done.wait (%p1934_p13), %s234_s1, 9264  }
  0x7a   : > { %1323 = vsyncadd (%p1934_p13), %s234_s1, 4294958032  ;;  %v1352_v0 = vmov 0.0|0.0   ;;  %v303_v1 = vld [vmem:[%s1557_s21 + $0x8] sm:$0xff]  ;;  %v306_v2 = vld [vmem:[%s1557_s21 + $0x20] sm:$0xff]  ;;  %vm374_vm0 = vcmask 523264   ;;  %vm608_vm1 = vcmask 1040384  }
  0x7b   : > { %1065 = vmatprep.subr.bf16.mxu1 %v1352_v0  ;;  %v304_v3 = vld [vmem:[%s1557_s21 + $0x10] sm:$0xff]  ;;  %v1017_v4 = vpack.c.bf16 %v306_v2, %v303_v1  ;;  %v307_v5 = vld [vmem:[%s1557_s21 + $0x28] sm:$0xff]  ;;  %v302_v6 = vld [vmem:[%s1557_s21] sm:$0xff]  ;;  %s282_s7 = smul.u32 3, %s1464_s29  ;;  %s862_s12 = scalar_lea.sflag [#allocation4], %s1554_s22 }
  0x7c   : > { %v305_v7 = vld [vmem:[%s1557_s21 + $0x18] sm:$0xff]  ;;  %v1066_v8 = vpack.c.bf16 %v307_v5, %v304_v3  ;;  %v312_v11 = vld [vmem:[%s1557_s21 + $0x50] sm:$0xff]  ;;  %v310_v12 = vld [vmem:[%s1557_s21 + $0x40] sm:$0xff]  ;;  %s1104_s8 = smul.u32 3, %s1554_s22  ;;  %p1935_p3 = scmp.ne.s32.totalorder %s1924_s30, 0 }
  0x7d   : > { %v1019_v9 = vpack.c.bf16 %v305_v7, %v302_v6  ;;  %v309_v10 = vld [vmem:[%s1557_s21 + $0x38] sm:$0xff]  ;;  %1018 = vmatprep.subr.bf16.mxu0 %v1017_v4  ;;  %v308_v15 = vld [vmem:[%s1557_s21 + $0x30] sm:$0xff]  ;;  %v311_v16 = vld [vmem:[%s1557_s21 + $0x48] sm:$0xff]  ;;  %p283_p1 = scmp.lt.s32.totalorder %s282_s7, 8  ;;  %s1105_s28 = smul.u32 168, %s1554_s22 }
  0x7e   : > { %v1021_v13 = vpack.c.bf16 %v312_v11, %v309_v10  ;;  %v313_v14 = vld [vmem:[%s1557_s21 + $0x58] sm:$0xff]  ;;  %1067 = vmatpush1.bf16.msra.mxu1 %v1066_v8  ;;  %v1023_v18 = vpack.c.bf16 %v311_v16, %v308_v15  ;;  %v315_v19 = vld [vmem:[%s1557_s21 + $0x68] sm:$0xff]  ;;  %v318_v20 = vld [vmem:[%s1557_s21 + $0x80] sm:$0xff]  ;;  %s246_s27 = scalar_lea.vmem [#allocation7], %s1104_s8  ;;  %s1016_s5 = smul.u32 384, %s1464_s29 }
  0x7f   : > { %1020 = vmatpush1.bf16.msra.mxu0 %v1019_v9  ;;  %v1069_v17 = vpack.c.bf16 %v313_v14, %v310_v12  ;;  %v316_v21 = vld [vmem:[%s1557_s21 + $0x70] sm:$0xff]  ;;  %1068 = vmatprep.subr.bf16.mxu1 %v1352_v0  ;;  %v1025_v22 = vpack.c.bf16 %v318_v20, %v315_v19  ;;  %v319_v23 = vld [vmem:[%s1557_s21 + $0x88] sm:$0xff]  ;;  %v314_v24 = vld [vmem:[%s1557_s21 + $0x60] sm:$0xff]  ;;  %s1943_s7 = smov (!%p283_p1, %s282_s7), 8  ;;  %s1833_s10 = scalar_lea.vmem [#allocation8], %s1105_s28 }
  0x80   : > { %1022 = vmatprep.subr.bf16.mxu0 %v1021_v13  ;;  %v317_v25 = vld [vmem:[%s1557_s21 + $0x78] sm:$0xff]  ;;  %v324_v27 = vld [vmem:[%s1557_s21 + $0xb0] sm:$0xff]  ;;  %v1072_v28 = vpack.c.bf16 %v319_v23, %v316_v21  ;;  %v322_v30 = vld [vmem:[%s1557_s21 + $0xa0] sm:$0xff]  ;;  %s285_s25 = scalar_lea.vmem %s1908_s3, %s1943_s7  ;;  %s875_s29 = sshll.u32 %s1833_s10, 4  ;;  %s1852_s29 = int_to_ptr.vmem [resolvable:$true] %s875_s29 }
  0x81   : > { %v321_v26 = vld [vmem:[%s1557_s21 + $0x98] sm:$0xff]  ;;  %v1027_v29 = vpack.c.bf16 %v317_v25, %v314_v24  ;;  %v320_v33 = vld [vmem:[%s1557_s21 + $0x90] sm:$0xff]  ;;  %v323_v34 = vld [vmem:[%s1557_s21 + $0xa8] sm:$0xff]  ;;  %s1846_s11 = scalar_lea.hbm %s1909_s4, %s1016_s5  ;;  %s1272_s13 = scalar_lea.vmem %s1852_s29, 2688 }
  0x82   : > { %1070 = vmatpush1.bf16.msra.mxu1 %v1069_v17  ;;  %v1029_v31 = vpack.c.bf16 %v324_v27, %v321_v26  ;;  %v325_v32 = vld [vmem:[%s1557_s21 + $0xb8] sm:$0xff]  ;;  %v327_v35 = vld [vmem:[%s1557_s21 + $0xc8] sm:$0xff]  ;;  %v330_v36 = vld [vmem:[%s1557_s21 + $0xe0] sm:$0xff]  ;;  %v1031_v38 = vpack.c.bf16 %v323_v34, %v320_v33  ;;  %p1273_p2 = scmp.ne.s32.totalorder %s1852_s29, %s1272_s13  ;;  %s1354_s20 = smov [#allocation8]  }
  0x83   : > { %1024 = vmatpush1.bf16.msra.mxu0 %v1023_v18  ;;  %1071 = vmatprep.subr.bf16.mxu1 %v1352_v0  ;;  %v1075_v37 = vpack.c.bf16 %v325_v32, %v322_v30  ;;  %v328_v39 = vld [vmem:[%s1557_s21 + $0xd0] sm:$0xff]  ;;  %v1033_v40 = vpack.c.bf16 %v330_v36, %v327_v35  ;;  %v331_v41 = vld [vmem:[%s1557_s21 + $0xe8] sm:$0xff]  ;;  %v326_v42 = vld [vmem:[%s1557_s21 + $0xc0] sm:$0xff]  ;;  %s1276_s17 = sshll.u32 %s1354_s20, 4  ;;  %s1277_s17 = int_to_ptr.vmem [resolvable:$false] %s1276_s17 }
  0x84   : > { %1026 = vmatprep.subr.bf16.mxu0 %v1025_v22  ;;  %v329_v43 = vld [vmem:[%s1557_s21 + $0xd8] sm:$0xff]  ;;  %v336_v45 = vld [vmem:[%s1557_s21 + $0x110] sm:$0xff]  ;;  %v1078_v46 = vpack.c.bf16 %v331_v41, %v328_v39  ;;  %v334_v48 = vld [vmem:[%s1557_s21 + $0x100] sm:$0xff]  ;;  %p1274_p10 = pnand %p1273_p2, %p1935_p3  ;;  %s1278_s26 = scalar_lea.vmem %s1277_s17, 5376 }
  0x85   : > { %v333_v44 = vld [vmem:[%s1557_s21 + $0xf8] sm:$0xff]  ;;  %v1035_v47 = vpack.c.bf16 %v329_v43, %v326_v42  ;;  %v332_v51 = vld [vmem:[%s1557_s21 + $0xf0] sm:$0xff]  ;;  %v335_v52 = vld [vmem:[%s1557_s21 + $0x108] sm:$0xff]  ;;  %p1279_p7 = scmp.lt.s32.totalorder %s1852_s29, %s1277_s17  ;;  %p1280_p5 = scmp.lt.s32.totalorder %s1278_s26, %s1272_s13 }
  0x86   : > { %1073 = vmatpush1.bf16.msra.mxu1 %v1072_v28  ;;  %v1037_v49 = vpack.c.bf16 %v336_v45, %v333_v44  ;;  %v337_v50 = vld [vmem:[%s1557_s21 + $0x118] sm:$0xff]  ;;  %v339_v53 = vld [vmem:[%s1557_s21 + $0x128] sm:$0xff]  ;;  %v342_v54 = vld [vmem:[%s1557_s21 + $0x140] sm:$0xff]  ;;  %v1039_v56 = vpack.c.bf16 %v335_v52, %v332_v51  ;;  %p1275_p12 = pneg %p1274_p10 }
  0x87   : > { %1028 = vmatpush1.bf16.msra.mxu0 %v1027_v29  ;;  %1074 = vmatprep.subr.bf16.mxu1 %v1352_v0  ;;  %v1081_v55 = vpack.c.bf16 %v337_v50, %v334_v48  ;;  %v340_v57 = vld [vmem:[%s1557_s21 + $0x130] sm:$0xff]  ;;  %v1041_v58 = vpack.c.bf16 %v342_v54, %v339_v53  ;;  %v343_v59 = vld [vmem:[%s1557_s21 + $0x148] sm:$0xff]  ;;  %v338_v60 = vld [vmem:[%s1557_s21 + $0x120] sm:$0xff]  ;;  %p1281_p4 = por %p1280_p5, %p1279_p7 }
  0x88   : > { %1030 = vmatprep.subr.bf16.mxu0 %v1029_v31  ;;  %v341_v61 = vld [vmem:[%s1557_s21 + $0x138] sm:$0xff]  ;;  %v348_v63 = vld [vmem:[%s1557_s21 + $0x170] sm:$0xff]  ;;  %v1084_v1 = vpack.c.bf16 %v343_v59, %v340_v57  ;;  %v346_v3 = vld [vmem:[%s1557_s21 + $0x160] sm:$0xff] }
  0x89   : > { %v345_v62 = vld [vmem:[%s1557_s21 + $0x158] sm:$0xff]  ;;  %v1043_v2 = vpack.c.bf16 %v341_v61, %v338_v60  ;;  %v344_v7 = vld [vmem:[%s1557_s21 + $0x150] sm:$0xff]  ;;  %v347_v8 = vld [vmem:[%s1557_s21 + $0x168] sm:$0xff]  ;;  %p1282_p8 = pnand %p1281_p4, %p1275_p12 }
  0x8a   : > { %1076 = vmatpush1.bf16.msra.mxu1 %v1075_v37  ;;  %v289_v4 = vld [vmem:[#allocation2 + $0x8] sm:$0xff]  ;;  %v1045_v5 = vpack.c.bf16 %v348_v63, %v345_v62  ;;  %v351_v9 = vld [vmem:[%s1557_s21 + $0x188] sm:$0xff]  ;;  %v354_v10 = vld [vmem:[%s1557_s21 + $0x1a0] sm:$0xff]  ;;  %v1047_v12 = vpack.c.bf16 %v347_v8, %v344_v7 }
  0x8b   : > { %1032 = vmatpush1.bf16.msra.mxu0 %v1031_v38  ;;  %1077 = vmatprep.subr.bf16.mxu1 %v1352_v0  ;;  %v349_v6 = vld [vmem:[%s1557_s21 + $0x178] sm:$0xff]  ;;  %v352_v13 = vld [vmem:[%s1557_s21 + $0x190] sm:$0xff]  ;;  %v1049_v14 = vpack.c.bf16 %v354_v10, %v351_v9  ;;  %v355_v15 = vld [vmem:[%s1557_s21 + $0x1a8] sm:$0xff] }
  0x8c   : > { %1034 = vmatprep.subr.bf16.mxu0 %v1033_v40  ;;  %1004 = vmatprep.mubr.msk.f32.mxu1 %vm374_vm0, %v289_v4  ;;  %v1087_v11 = vpack.c.bf16 %v349_v6, %v346_v3  ;;  %v350_v16 = vld [vmem:[%s1557_s21 + $0x180] sm:$0xff]  ;;  %v353_v17 = vld [vmem:[%s1557_s21 + $0x198] sm:$0xff]  ;;  %v360_v19 = vld [vmem:[%s1557_s21 + $0x1d0] sm:$0xff]  ;;  %v1090_v20 = vpack.c.bf16 %v355_v15, %v352_v13 }
  0x8d   : > { %997 = vmatprep.mubr.msk.f32.mxu0 %vm374_vm0, %v289_v4  ;;  %v357_v18 = vld [vmem:[%s1557_s21 + $0x1b8] sm:$0xff]  ;;  %v1051_v21 = vpack.c.bf16 %v353_v17, %v350_v16  ;;  %v358_v22 = vld [vmem:[%s1557_s21 + $0x1c0] sm:$0xff]  ;;  %v356_v25 = vld [vmem:[%s1557_s21 + $0x1b0] sm:$0xff] }
  0x8e   : > { %1079 = vmatpush1.bf16.msra.mxu1 %v1078_v46  ;;  %v1053_v23 = vpack.c.bf16 %v360_v19, %v357_v18  ;;  %v361_v24 = vld [vmem:[%s1557_s21 + $0x1d8] sm:$0xff]  ;;  %v359_v26 = vld [vmem:[%s1557_s21 + $0x1c8] sm:$0xff]  ;;  %v366_v28 = vld [vmem:[%s1557_s21 + $0x200] sm:$0xff] }
  0x8f   : > { %1036 = vmatpush1.bf16.msra.mxu0 %v1035_v47  ;;  %1080 = vmatprep.subr.bf16.mxu1 %v1352_v0  ;;  %v363_v27 = vld [vmem:[%s1557_s21 + $0x1e8] sm:$0xff]  ;;  %v1093_v29 = vpack.c.bf16 %v361_v24, %v358_v22  ;;  %v1055_v30 = vpack.c.bf16 %v359_v26, %v356_v25  ;;  %v364_v31 = vld [vmem:[%s1557_s21 + $0x1f0] sm:$0xff]  ;;  %v362_v34 = vld [vmem:[%s1557_s21 + $0x1e0] sm:$0xff] }
  0x90   : > { %1038 = vmatprep.subr.bf16.mxu0 %v1037_v49  ;;  %v1057_v32 = vpack.c.bf16 %v366_v28, %v363_v27  ;;  %v367_v33 = vld [vmem:[%s1557_s21 + $0x208] sm:$0xff]  ;;  %v365_v35 = vld [vmem:[%s1557_s21 + $0x1f8] sm:$0xff]  ;;  %v372_v37 = vld [vmem:[%s1557_s21 + $0x230] sm:$0xff] }
  0x91   : > { %v369_v36 = vld [vmem:[%s1557_s21 + $0x218] sm:$0xff]  ;;  %v1096_v38 = vpack.c.bf16 %v367_v33, %v364_v31  ;;  %v1059_v39 = vpack.c.bf16 %v365_v35, %v362_v34  ;;  %v370_v40 = vld [vmem:[%s1557_s21 + $0x220] sm:$0xff]  ;;  %v368_v43 = vld [vmem:[%s1557_s21 + $0x210] sm:$0xff] }
  0x92   : > { %1082 = vmatpush1.bf16.msra.mxu1 %v1081_v55  ;;  %v1061_v41 = vpack.c.bf16 %v372_v37, %v369_v36  ;;  %v373_v42 = vld [vmem:[%s1557_s21 + $0x238] sm:$0xff]  ;;  %v371_v44 = vld [vmem:[%s1557_s21 + $0x228] sm:$0xff]  ;;  %v288_v47 = vld [vmem:[#allocation2] sm:$0xff] }
  0x93   : > { %1040 = vmatpush1.bf16.msra.mxu0 %v1039_v56  ;;  %1083 = vmatprep.subr.bf16.mxu1 %v1352_v0  ;;  %v1099_v45 = vpack.c.bf16 %v373_v42, %v370_v40  ;;  %v1063_v46 = vpack.c.bf16 %v371_v44, %v368_v43  ;;  %v291_v48 = vld [vmem:[#allocation2 + $0x18] sm:$0xff]  ;;  %v290_v49 = vld [vmem:[#allocation2 + $0x10] sm:$0xff]  ;;  %v293_v50 = vld [vmem:[#allocation2 + $0x28] sm:$0xff] }
  0x94   : > { %1042 = vmatprep.subr.bf16.mxu0 %v1041_v58  ;;  %v295_v51 = vld [vmem:[#allocation2 + $0x38] sm:$0xff]  ;;  %v294_v52 = vld [vmem:[#allocation2 + $0x30] sm:$0xff]  ;;  %v297_v53 = vld [vmem:[#allocation2 + $0x48] sm:$0xff] }
  0x95   : > { %v296_v54 = vld [vmem:[#allocation2 + $0x40] sm:$0xff]  ;;  %v299_v55 = vld [vmem:[#allocation2 + $0x58] sm:$0xff]  ;;  %v298_v56 = vld [vmem:[#allocation2 + $0x50] sm:$0xff] }
  0x96   : > { %1085 = vmatpush1.bf16.msra.mxu1 %v1084_v1  ;;  %v301_v57 = vld [vmem:[#allocation2 + $0x68] sm:$0x1]  ;;  %v300_v58 = vld [vmem:[#allocation2 + $0x60] sm:$0x1] }
  0x97   : > { %1044 = vmatpush1.bf16.msra.mxu0 %v1043_v2  ;;  %1086 = vmatprep.subr.bf16.mxu1 %v1352_v0 }
  0x98   : > { %1046 = vmatprep.subr.bf16.mxu0 %v1045_v5 }
  0x9a   : > { %1088 = vmatpush1.bf16.msra.mxu1 %v1087_v11 }
  0x9b   : > { %1048 = vmatpush1.bf16.msra.mxu0 %v1047_v12  ;;  %1089 = vmatprep.subr.bf16.mxu1 %v1352_v0 }
  0x9c   : > { %1050 = vmatprep.subr.bf16.mxu0 %v1049_v14 }
  0x9e   : > { %1091 = vmatpush1.bf16.msra.mxu1 %v1090_v20 }
  0x9f   : > { %1052 = vmatpush1.bf16.msra.mxu0 %v1051_v21  ;;  %1092 = vmatprep.subr.bf16.mxu1 %v1352_v0 }
  0xa0   : > { %1054 = vmatprep.subr.bf16.mxu0 %v1053_v23 }
  0xa2   : > { %1094 = vmatpush1.bf16.msra.mxu1 %v1093_v29 }
  0xa3   : > { %1056 = vmatpush1.bf16.msra.mxu0 %v1055_v30  ;;  %1095 = vmatprep.subr.bf16.mxu1 %v1352_v0 }
  0xa4   : > { %1058 = vmatprep.subr.bf16.mxu0 %v1057_v32 }
  0xa6   : > { %1097 = vmatpush1.bf16.msra.mxu1 %v1096_v38 }
  0xa7   : > { %1060 = vmatpush1.bf16.msra.mxu0 %v1059_v39  ;;  %1098 = vmatprep.subr.bf16.mxu1 %v1352_v0  ;;  %v292_v0 = vld [vmem:[#allocation2 + $0x20] sm:$0xff] }
  0xa8   : > { %1062 = vmatprep.subr.bf16.mxu0 %v1061_v41 }
  0xaa   : > { %1100 = vmatpush1.bf16.msra.mxu1 %v1099_v45 }
  0xab   : > { %1064 = vmatpush1.bf16.msra.mxu0 %v1063_v46 }
  0xad   : > { %568 = vmatmul.mubr.f32.vlgmr.msra.gmra.mrb[0].mxu1 %v288_v47 }
  0xae   : > { %461 = vmatmul.mubr.f32.vlgmr.msra.gmra.mrb[0].mxu0 %v288_v47  ;;  %1005 = vmatprep.mubr.msk.f32.mxu1 %vm374_vm0, %v291_v48 }
  0xaf   : > { %998 = vmatprep.mubr.msk.f32.mxu0 %vm374_vm0, %v291_v48 }
  0xb1   : > { %573 = vmatmul.mubr.f32.gmra.mrb[2].mxu1 %v290_v49 }
  0xb2   : > { %467 = vmatmul.mubr.f32.gmra.mrb[2].mxu0 %v290_v49  ;;  %1006 = vmatprep.mubr.msk.f32.mxu1 %vm374_vm0, %v293_v50 }
  0xb3   : > { %999 = vmatprep.mubr.msk.f32.mxu0 %vm374_vm0, %v293_v50 }
  0xb5   : > { %578 = vmatmul.mubr.f32.gmra.mrb[4].mxu1 %v292_v0 }
  0xb6   : > { %473 = vmatmul.mubr.f32.gmra.mrb[4].mxu0 %v292_v0  ;;  %1007 = vmatprep.mubr.msk.f32.mxu1 %vm374_vm0, %v295_v51 }
  0xb7   : > { %1000 = vmatprep.mubr.msk.f32.mxu0 %vm374_vm0, %v295_v51 }
  0xb9   : > { %583 = vmatmul.mubr.f32.gmra.mrb[6].mxu1 %v294_v52 }
  0xba   : > { %479 = vmatmul.mubr.f32.gmra.mrb[6].mxu0 %v294_v52  ;;  %1008 = vmatprep.mubr.msk.f32.mxu1 %vm374_vm0, %v297_v53 }
  0xbb   : > { %1001 = vmatprep.mubr.msk.f32.mxu0 %vm374_vm0, %v297_v53 }
  0xbd   : > { %588 = vmatmul.mubr.f32.gmra.mrb[8].mxu1 %v296_v54 }
  0xbe   : > { %485 = vmatmul.mubr.f32.gmra.mrb[8].mxu0 %v296_v54  ;;  %1009 = vmatprep.mubr.msk.f32.mxu1 %vm374_vm0, %v299_v55 }
  0xbf   : > { %1002 = vmatprep.mubr.msk.f32.mxu0 %vm374_vm0, %v299_v55 }
  0xc1   : > { %593 = vmatmul.mubr.f32.gmra.mrb[10].mxu1 %v298_v56 }
  0xc2   : > { %491 = vmatmul.mubr.f32.gmra.mrb[10].mxu0 %v298_v56  ;;  %1010 = vmatprep.mubr.msk.f32.mxu1 %vm374_vm0, %v301_v57 }
  0xc3   : > { %1003 = vmatprep.mubr.msk.f32.mxu0 %vm374_vm0, %v301_v57 }
  0xc5   : > { %598 = vmatmul.mubr.f32.gmra.mrb[12].mxu1 %v300_v58 }
  0xc6   : > { %497 = vmatmul.mubr.f32.gmra.mrb[12].mxu0 %v300_v58 }
 0x180   : > { %v1663_v60 = vpop.f32.mrb[0].mxu1 }
 0x181   : > { %v1661_v59 = vpop.f32.mrb[0].mxu0  ;;  %v571_v62 = vpop.f32.mrb[1].mxu1 }
 0x182   : > { %v1665_v61 = vpop.f32.mrb[1].mxu0 }
 0x184   : > { %v1667_v63 = vpop.f32.mrb[2].mxu1 }
 0x185   : > { %v1669_v1 = vpop.f32.mrb[2].mxu0  ;;  %v630_v2 = vadd.f32 %v1667_v63, %v1663_v60  ;;  %v576_v5 = vpop.f32.mrb[3].mxu1 }
 0x186   : > { %v603_v3 = vadd.f32 %v1669_v1, %v1661_v59  ;;  %v1675_v4 = vpop.f32.mrb[3].mxu0 }
 0x187   : > { %v617_v6 = vadd.f32 %v1675_v4, %v1665_v61 }
 0x188   : > { %v579_v7 = vpop.f32.mrb[4].mxu1 }
 0x189   : > { %v1679_v8 = vpop.f32.mrb[4].mxu0  ;;  %v631_v9 = vadd.f32 %v630_v2, %v579_v7  ;;  %v581_v12 = vpop.f32.mrb[5].mxu1 }
 0x18a   : > { %v604_v10 = vadd.f32 %v603_v3, %v1679_v8  ;;  %v1682_v11 = vpop.f32.mrb[5].mxu0 }
 0x18b   : > { %v618_v13 = vadd.f32 %v617_v6, %v1682_v11 }
 0x18c   : > { %v584_v14 = vpop.f32.mrb[6].mxu1 }
 0x18d   : > { %v1685_v15 = vpop.f32.mrb[6].mxu0  ;;  %v632_v16 = vadd.f32 %v631_v9, %v584_v14  ;;  %v586_v19 = vpop.f32.mrb[7].mxu1 }
 0x18e   : > { %v605_v17 = vadd.f32 %v604_v10, %v1685_v15  ;;  %v1688_v18 = vpop.f32.mrb[7].mxu0 }
 0x18f   : > { %v619_v20 = vadd.f32 %v618_v13, %v1688_v18 }
 0x190   : > { %v589_v21 = vpop.f32.mrb[8].mxu1 }
 0x191   : > { %v486_v22 = vpop.f32.mrb[8].mxu0  ;;  %v633_v23 = vadd.f32 %v632_v16, %v589_v21  ;;  %v591_v26 = vpop.f32.mrb[9].mxu1 }
 0x192   : > { %v606_v24 = vadd.f32 %v605_v17, %v486_v22  ;;  %v1691_v25 = vpop.f32.mrb[9].mxu0 }
 0x193   : > { %v620_v27 = vadd.f32 %v619_v20, %v1691_v25 }
 0x194   : > { %v594_v28 = vpop.f32.mrb[10].mxu1 }
 0x195   : > { %v492_v29 = vpop.f32.mrb[10].mxu0  ;;  %v634_v30 = vadd.f32 %v633_v23, %v594_v28  ;;  %v596_v33 = vpop.f32.mrb[11].mxu1 }
 0x196   : > { %v607_v31 = vadd.f32 %v606_v24, %v492_v29  ;;  %v1694_v32 = vpop.f32.mrb[11].mxu0 }
 0x197   : > { %v621_v34 = vadd.f32 %v620_v27, %v1694_v32 }
 0x198   : > { %v599_v35 = vpop.f32.mrb[12].mxu1 }
 0x199   : > { %v498_v36 = vpop.f32.mrb[12].mxu0  ;;  %v635_v37 = vsel %vm608_vm1, %v599_v35, 0.0  ;;  %v601_v40 = vpop.f32.mrb[13].mxu1 }
 0x19a   : > { %v609_v38 = vsel %vm608_vm1, %v498_v36, 0.0  ;;  %v1699_v39 = vpop.f32.mrb[13].mxu0  ;;  %v636_v41 = vadd.f32 %v635_v37, %v634_v30 }
 0x19b   : > { %v610_v42 = vadd.f32 %v609_v38, %v607_v31  ;;  %v622_v43 = vsel %vm608_vm1, %v1699_v39, 0.0 }
 0x19c   : > { %v623_v44 = vadd.f32 %v622_v43, %v621_v34  ;;  %v637_v45 = vrot.slane %v636_v41, 4 }
 0x19d   : > { %v611_v46 = vrot.slane %v610_v42, 4 }
 0x19e   : > { %v624_v47 = vrot.slane %v623_v44, 4  ;;  %v638_v48 = vadd.f32 %v637_v45, %v636_v41 }
 0x19f   : > { %v612_v49 = vadd.f32 %v611_v46, %v610_v42 }
 0x1a0   : > { %v625_v50 = vadd.f32 %v624_v47, %v623_v44  ;;  %v639_v0 = vrot.slane %v638_v48, 2 }
 0x1a1   : > { %v613_v51 = vrot.slane %v612_v49, 2 }
 0x1a2   : > { %v626_v52 = vrot.slane %v625_v50, 2  ;;  %v640_v53 = vadd.f32 %v639_v0, %v638_v48 }
 0x1a3   : > { %v614_v54 = vadd.f32 %v613_v51, %v612_v49 }
 0x1a4   : > { %v627_v55 = vadd.f32 %v626_v52, %v625_v50  ;;  %v641_v56 = vrot.slane %v640_v53, 1 }
 0x1a5   : > { %v615_v57 = vrot.slane %v614_v54, 1 }
 0x1a6   : > { %v628_v58 = vrot.slane %v627_v55, 1  ;;  %v642_v62 = vadd.f32 %v641_v56, %v640_v53 }
 0x1a7   : > { %v616_v2 = vadd.f32 %v615_v57, %v614_v54 }
 0x1a8   : > { %v645_v3 = vmul.f32 0.020408163, %v642_v62  ;;  %v629_v6 = vadd.f32 %v628_v58, %v627_v55 }
 0x1a9   : > { %v643_v5 = vmul.f32 0.020408163, %v616_v2 }
 0x1aa   : > { %v1704_v9 = vsub.f32 %v1663_v60, %v645_v3  ;;  %v1707_v10 = vsub.f32 %v1667_v63, %v645_v3  ;;  %v1709_v12 = vsub.f32 %v579_v7, %v645_v3  ;;  %v1711_v13 = vsub.f32 %v584_v14, %v645_v3 }
 0x1ab   : > { %v1713_v16 = vsub.f32 %v589_v21, %v645_v3  ;;  %v1715_v17 = vsub.f32 %v594_v28, %v645_v3  ;;  %v1717_v19 = vsub.f32 %v599_v35, %v645_v3  ;;  %v1720_v20 = vsub.f32 %v1661_v59, %v643_v5 }
 0x1ac   : > { %v669_v60 = vmul.f32 %v1704_v9, %v1704_v9  ;;  %v672_v63 = vmul.f32 %v1707_v10, %v1707_v10  ;;  %v675_v7 = vmul.f32 %v1709_v12, %v1709_v12  ;;  %v1729_v14 = vsub.f32 %v1669_v1, %v643_v5 }
 0x1ad   : > { %v644_v21 = vmul.f32 0.020408163, %v629_v6  ;;  %v1732_v24 = vsub.f32 %v1679_v8, %v643_v5  ;;  %v1735_v59 = vsub.f32 %v1685_v15, %v643_v5  ;;  %v1737_v26 = vsub.f32 %v486_v22, %v643_v5 }
 0x1ae   : > { %v714_v23 = vadd.f32 %v672_v63, %v669_v60  ;;  %v1739_v27 = vsub.f32 %v492_v29, %v643_v5  ;;  %v1741_v28 = vsub.f32 %v498_v36, %v643_v5  ;;  %v667_v30 = vmul.f32 %v1720_v20, %v1720_v20 }
 0x1af   : > { %v678_v1 = vmul.f32 %v1711_v13, %v1711_v13  ;;  %v681_v31 = vmul.f32 %v1713_v16, %v1713_v16  ;;  %v670_v15 = vmul.f32 %v1729_v14, %v1729_v14  ;;  %v684_v22 = vmul.f32 %v1715_v17, %v1715_v17 }
 0x1b0   : > { %v715_v8 = vadd.f32 %v714_v23, %v675_v7  ;;  %v687_v29 = vmul.f32 %v1717_v19, %v1717_v19  ;;  %v673_v33 = vmul.f32 %v1732_v24, %v1732_v24  ;;  %v1758_v34 = vsub.f32 %v1665_v61, %v644_v21 }
 0x1b1   : > { %v688_v36 = vadd.f32 %v670_v15, %v667_v30  ;;  %v1761_v37 = vsub.f32 %v1675_v4, %v644_v21  ;;  %v1764_v38 = vsub.f32 %v1682_v11, %v644_v21  ;;  %v676_v40 = vmul.f32 %v1735_v59, %v1735_v59 }
 0x1b2   : > { %v716_v35 = vadd.f32 %v715_v8, %v678_v1  ;;  %v1769_v41 = vsub.f32 %v1688_v18, %v644_v21  ;;  %v1772_v42 = vsub.f32 %v1691_v25, %v644_v21  ;;  %v1775_v61 = vsub.f32 %v1694_v32, %v644_v21 }
 0x1b3   : > { %v689_v44 = vadd.f32 %v688_v36, %v673_v33  ;;  %v1778_v4 = vsub.f32 %v1699_v39, %v644_v21  ;;  %v668_v11 = vmul.f32 %v1758_v34, %v1758_v34  ;;  %v671_v45 = vmul.f32 %v1761_v37, %v1761_v37 }
 0x1b4   : > { %v717_v43 = vadd.f32 %v716_v35, %v681_v31  ;;  %v679_v18 = vmul.f32 %v1737_v26, %v1737_v26  ;;  %v719_v47 = vsel %vm608_vm1, %v687_v29, 0.0  ;;  %v685_v32 = vmul.f32 %v1741_v28, %v1741_v28 }
 0x1b5   : > { %v690_v25 = vadd.f32 %v689_v44, %v676_v40  ;;  %v674_v39 = vmul.f32 %v1764_v38, %v1764_v38  ;;  %v701_v48 = vadd.f32 %v671_v45, %v668_v11  ;;  %v682_v50 = vmul.f32 %v1739_v27, %v1739_v27 }
 0x1b6   : > { %v718_v46 = vadd.f32 %v717_v43, %v684_v22  ;;  %v677_v51 = vmul.f32 %v1769_v41, %v1769_v41  ;;  %v693_v55 = vsel %vm608_vm1, %v685_v32, 0.0  ;;  %v680_v56 = vmul.f32 %v1772_v42, %v1772_v42 }
 0x1b7   : > { %v691_v0 = vadd.f32 %v690_v25, %v679_v18  ;;  %v702_v52 = vadd.f32 %v701_v48, %v674_v39  ;;  %v686_v2 = vmul.f32 %v1778_v4, %v1778_v4  ;;  %v683_v3 = vmul.f32 %v1775_v61, %v1775_v61 }
 0x1b8   : > { %v720_v49 = vadd.f32 %v719_v47, %v718_v46  ;;  %v1353_v32 = vmov 1966171168   ;;  %v744_v48 = vlaneseq }
 0x1b9   : > { %v692_v54 = vadd.f32 %v691_v0, %v682_v50  ;;  %v703_v57 = vadd.f32 %v702_v52, %v677_v51  ;;  %v706_v23 = vsel %vm608_vm1, %v686_v2, 0.0  ;;  %v742_v39 = vunpack.c.l.s4 %v1353_v32 }
 0x1ba   : > { %v721_v53 = vrot.slane %v720_v49, 4  ;;  %v745_v50 = vshrl.u32 %v744_v48, 7 }
 0x1bb   : > { %v694_v62 = vadd.f32 %v693_v55, %v692_v54  ;;  %v704_v5 = vadd.f32 %v703_v57, %v680_v56 }
 0x1bc   : > { %v722_v58 = vadd.f32 %v721_v53, %v720_v49  ;;  %v743_v49 = vunpack.c.0.s8 %v742_v39  ;;  %v768_v2 = vsub.s32 0, %v745_v50 }
 0x1bd   : > { %v695_v60 = vrot.slane %v694_v62, 4  ;;  %v705_v63 = vadd.f32 %v704_v5, %v683_v3  ;;  %v772_v3 = vsub.s32 1, %v745_v50  ;;  %v776_v5 = vsub.s32 2, %v745_v50 }
 0x1be   : > { %v723_v6 = vrot.slane %v722_v58, 2  ;;  %v746_v52 = vsub.s32 %v743_v49, %v745_v50 }
 0x1bf   : > { %v696_v21 = vadd.f32 %v695_v60, %v694_v62  ;;  %v707_v30 = vadd.f32 %v706_v23, %v705_v63  ;;  %v802_v60 = vld [vmem:[%s285_s25] sm:$0x7] }
 0x1c0   : > { %v724_v7 = vadd.f32 %v723_v6, %v722_v58  ;;  %v730_v58 = vld [vmem:[%s246_s27] sm:$0x7]  ;;  %v807_v23 = vrot.slane %v802_v60, %v768_v2 }
 0x1c1   : > { %v697_v31 = vrot.slane %v696_v21, 2  ;;  %v708_v8 = vrot.slane %v707_v30, 4 }
 0x1c2   : > { %v725_v1 = vrot.slane %v724_v7, 1 }
 0x1c3   : > { %v698_v15 = vadd.f32 %v697_v31, %v696_v21  ;;  %v709_v22 = vadd.f32 %v708_v8, %v707_v30  ;;  %v811_v30 = vrot.slane %v802_v60, %v772_v3 }
 0x1c4   : > { %v726_v29 = vadd.f32 %v725_v1, %v724_v7  ;;  %v815_v1 = vrot.slane %v802_v60, %v776_v5 }
 0x1c5   : > { %v699_v33 = vrot.slane %v698_v15, 1  ;;  %v710_v35 = vrot.slane %v709_v22, 2 }
 0x1c6   : > { %v729_v43 = vmul.f32 0.020408163, %v726_v29 }
 0x1c7   : > { %v700_v36 = vadd.f32 %v699_v33, %v698_v15  ;;  %v711_v40 = vadd.f32 %v710_v35, %v709_v22 }
 0x1c8   : > { %v733_v18 = vadd.f32 1e-05, %v729_v43 }
 0x1c9   : > { %v727_v44 = vmul.f32 0.020408163, %v700_v36  ;;  %v712_v11 = vrot.slane %v711_v40, 1 }
 0x1cb   : > { %v731_v45 = vadd.f32 1e-05, %v727_v44  ;;  %v713_v46 = vadd.f32 %v712_v11, %v711_v40 }
 0x1cd   : > { %v728_v25 = vmul.f32 0.020408163, %v713_v46  ;;  %1178 = vrsqrt.f32 %v731_v45 }
 0x1ce   : > { %1180 = vrsqrt.f32 %v733_v18 }
 0x1cf   : > { %v732_v47 = vadd.f32 1e-05, %v728_v25 }
 0x1d1   : > { %1182 = vrsqrt.f32 %v732_v47 }
 0x1d7   : > { %v1179_v0 = vpop.eup %1178 }
 0x1d8   : > { %v1181_v51 = vpop.eup %1180 }
 0x1d9   : > { %v754_v55 = vrot.slane %v1181_v51, %v746_v52 }
 0x1db   : > { %v1183_v53 = vpop.eup %1182 }
 0x1dc   : > { %v740_v54 = vcombine.low %v1179_v0, %v1183_v53 }
 0x1de   : > { %v747_v56 = vrot.slane %v740_v54, %v746_v52 }
 0x1e0   : > { %v755_v57 = vcombine.low %v747_v56, %v754_v55 }
 0x1e2   : > { %v762_v62 = vrot.slane %v755_v57, %v746_v52 }
 0x1e4   : > { %v764_v6 = vmul.f32 %v762_v62, %v730_v58 }
 0x1e6   : > { %v769_v63 = vrot.slane %v764_v6, %v768_v2  ;;  %v773_v7 = vrot.slane %v764_v6, %v772_v3  ;;  %v777_v21 = vrot.slane %v764_v6, %v776_v5 }
 0x1e8   : > { %v781_v31 = vmul.f32 %v769_v63, %v1720_v20  ;;  %v782_v8 = vmul.f32 %v773_v7, %v1758_v34  ;;  %v783_v15 = vmul.f32 %v777_v21, %v1704_v9  ;;  %v784_v22 = vmul.f32 %v769_v63, %v1729_v14 }
 0x1e9   : > { %v785_v29 = vmul.f32 %v773_v7, %v1761_v37  ;;  %v786_v33 = vmul.f32 %v777_v21, %v1707_v10  ;;  %v787_v35 = vmul.f32 %v769_v63, %v1732_v24  ;;  %v788_v36 = vmul.f32 %v773_v7, %v1764_v38 }
 0x1ea   : > { %v789_v40 = vmul.f32 %v777_v21, %v1709_v12  ;;  %v790_v43 = vmul.f32 %v769_v63, %v1735_v59  ;;  %v791_v20 = vmul.f32 %v773_v7, %v1769_v41  ;;  %v792_v34 = vmul.f32 %v777_v21, %v1711_v13 }
 0x1eb   : > { %v793_v9 = vmul.f32 %v769_v63, %v1737_v26  ;;  %v794_v14 = vmul.f32 %v773_v7, %v1772_v42  ;;  %v795_v37 = vmul.f32 %v777_v21, %v1713_v16  ;;  %v796_v10 = vmul.f32 %v769_v63, %v1739_v27 }
 0x1ec   : > { %v797_v24 = vmul.f32 %v773_v7, %v1775_v61  ;;  %v798_v38 = vmul.f32 %v777_v21, %v1715_v17  ;;  %v799_v12 = vmul.f32 %v769_v63, %v1741_v28  ;;  %v800_v59 = vmul.f32 %v773_v7, %v1778_v4 }
 0x1ed   : > { %v801_v13 = vmul.f32 %v777_v21, %v1717_v19  ;;  %v819_v41 = vadd.f32 %v807_v23, %v781_v31  ;;  %v820_v26 = vadd.f32 %v811_v30, %v782_v8  ;;  %v821_v44 = vadd.f32 %v815_v1, %v783_v15 }
 0x1ee   : > { %v822_v42 = vadd.f32 %v807_v23, %v784_v22  ;;  %v823_v11 = vadd.f32 %v811_v30, %v785_v29  ;;  %v824_v45 = vadd.f32 %v815_v1, %v786_v33  ;;  %v825_v16 = vadd.f32 %v807_v23, %v787_v35 }
 0x1ef   : > { %v826_v17 = vadd.f32 %v811_v30, %v788_v36  ;;  %v827_v19 = vadd.f32 %v815_v1, %v789_v40  ;;  %v828_v27 = vadd.f32 %v807_v23, %v790_v43  ;;  %v829_v28 = vadd.f32 %v811_v30, %v791_v20  ;;  %840 = vst [vmem:[%s1833_s10] sm:$0xff] %v819_v41 }
 0x1f0   : > { %841 = vst [vmem:[%s1833_s10 + $0x8] sm:$0xff] %v820_v26  ;;  %842 = vst [vmem:[%s1833_s10 + $0x10] sm:$0xff] %v821_v44  ;;  %v830_v61 = vadd.f32 %v815_v1, %v792_v34  ;;  %v831_v4 = vadd.f32 %v807_v23, %v793_v9  ;;  %v832_v46 = vadd.f32 %v811_v30, %v794_v14 }
 0x1f1   : > { %v833_v18 = vadd.f32 %v815_v1, %v795_v37  ;;  %843 = vst [vmem:[%s1833_s10 + $0x18] sm:$0xff] %v822_v42  ;;  %844 = vst [vmem:[%s1833_s10 + $0x20] sm:$0xff] %v823_v11  ;;  %v834_v25 = vadd.f32 %v807_v23, %v796_v10  ;;  %v835_v47 = vadd.f32 %v811_v30, %v797_v24 }
 0x1f2   : > { %845 = vst [vmem:[%s1833_s10 + $0x28] sm:$0xff] %v824_v45  ;;  %846 = vst [vmem:[%s1833_s10 + $0x30] sm:$0xff] %v825_v16  ;;  %v836_v32 = vadd.f32 %v815_v1, %v798_v38  ;;  %v837_v39 = vadd.f32 %v807_v23, %v799_v12  ;;  %v838_v48 = vadd.f32 %v811_v30, %v800_v59 }
 0x1f3   : > { %847 = vst [vmem:[%s1833_s10 + $0x38] sm:$0xff] %v826_v17  ;;  %848 = vst [vmem:[%s1833_s10 + $0x40] sm:$0xff] %v827_v19  ;;  %v839_v49 = vadd.f32 %v815_v1, %v801_v13 }
 0x1f4   : > { %849 = vst [vmem:[%s1833_s10 + $0x48] sm:$0xff] %v828_v27  ;;  %850 = vst [vmem:[%s1833_s10 + $0x50] sm:$0xff] %v829_v28 }
 0x1f5   : > { %851 = vst [vmem:[%s1833_s10 + $0x58] sm:$0xff] %v830_v61  ;;  %852 = vst [vmem:[%s1833_s10 + $0x60] sm:$0xff] %v831_v4 }
 0x1f6   : > { %853 = vst [vmem:[%s1833_s10 + $0x68] sm:$0xff] %v832_v46  ;;  %854 = vst [vmem:[%s1833_s10 + $0x70] sm:$0xff] %v833_v18 }
 0x1f7   : > { %855 = vst [vmem:[%s1833_s10 + $0x78] sm:$0xff] %v834_v25  ;;  %856 = vst [vmem:[%s1833_s10 + $0x80] sm:$0xff] %v835_v47 }
 0x1f8   : > { %857 = vst [vmem:[%s1833_s10 + $0x88] sm:$0xff] %v836_v32  ;;  %858 = vst [vmem:[%s1833_s10 + $0x90] sm:$0x1] %v837_v39 }
 0x1f9   : > { %859 = vst [vmem:[%s1833_s10 + $0x98] sm:$0x1] %v838_v48  ;;  %860 = vst [vmem:[%s1833_s10 + $0xa0] sm:$0x1] %v839_v49 }
 0x1fa   : > { %1285 = shalt.err (!%p1282_p8)
}
 0x1fb   : > { %s1286_s1 = scalar_lea.hbm %s1846_s11, 2688  ;;  %s1290_s8 = scalar_lea.hbm %s1909_s4, 8064 }
 0x1fc   : > { %p1287_p11 = scmp.ne.s32.totalorder %s1846_s11, %s1286_s1  ;;  %p1291_p0 = scmp.lt.u32.totalorder %s1846_s11, %s1909_s4 }
 0x1fd   : > { %p1292_p13 = scmp.lt.u32.totalorder %s1290_s8, %s1286_s1  ;;  %p1294_p2 = scmp.lt.u32.totalorder %s1286_s1, %s1846_s11 }
 0x1fe   : > { %p1288_p6 = pnand %p1287_p11, %p1935_p3 }
 0x1ff   : > { %p1293_p1 = por %p1292_p13, %p1291_p0 }
 0x200   : > { %p1289_p9 = pneg %p1288_p6 }
 0x201   : > { %p1295_p10 = por %p1294_p2, %p1293_p1 }
 0x203   : > { %p1296_p12 = pnand %p1295_p10, %p1289_p9 }
 0x205   : > { %1299 = shalt.err (!%p1296_p12)
}
 0x206   : > { %s1355_s25 = smov 384   ;;  %s1356_s27 = smov 1152  }
 0x207   : > { %s1357_s28 = smov 24  }
 0x208   : > { %1114 = dma.vmem_to_hbm [thread:$0]  (%p1935_p3), %s1852_s29, 2688, %s1846_s11, %s862_s12, %s1355_s25, %s1356_s27, %s1357_s28  }
 0x209 PF: > { %p1134_p7 = scmp.ge.s32.totalorder %s1342_s18, 2  ;;  %s890_s5 = sand.u32 1, %s1330_s15  }
 0x20a   : > { %p1936_p5 = scmp.ne.s32.totalorder %s1925_s6, 0  ;;  %s891_s10 = scalar_lea.sflag [#allocation4], %s890_s5 }
 0x20c   : > { %p1128_p4 = pnand %p1134_p7, %p1936_p5 }
 0x20e   : > { %1325 = dma.done.wait (!%p1128_p4), %s891_s10, 2688  }
 0x20f   : > { %1327 = vsyncadd (!%p1128_p4), %s891_s10, 4294964608  ;;  %s1937_s24 = sld [smem:[#allocation12_spill]]  ;;  %s1938_s17 = sld [smem:[#allocation13_spill]] }
 0x210   : > { %p18_p8 = scmp.ge.s32.totalorder %s1404_s19, 5   ;;  %s1939_s15 = smov %s1334_s16 }
 0x211   : > { %s1941_s18 = smov %s1404_s19 }
 0x212   :  { %20 = sbr.rel (!%p18_p8) target bundleno = 8 (0x8), region = 100 }
 0x215   : > { %s1940_s16 = smov %s1937_s24 }
 0x219   :  { %896 = vsyncpa [#allocation3], 1 }
 0x21a   :  { %898 = vsyncpa [#allocation3 + $0x1], 1 }
 0x21b   :  { %899 = vsyncpa [#allocation6], 1 }
 0x21c   :  { %901 = vsyncpa [#allocation6 + $0x1], 1 }
 0x21d   :  { %902 = vsyncpa [#allocation4], 1 }
 0x21e   :  { %904 = vsyncpa [#allocation4 + $0x1], 1 }

</bundles_post_ra>
